<compile_context>
chip_gen: v6e
topology: v6e:2x2x1
jax: 0.10.0
libtpu: 0.0.40
codegen_flags: <defaults>
</compile_context>

<pallas_src>
import functools

import numpy as np
import jax
import jax.numpy as jnp
from jax.experimental import pallas as pl
from jax.experimental.pallas import tpu as pltpu


def _round_up(v, m):
    return ((v + m - 1) // m) * m


def _itemsize(dt):
    return np.dtype(dt).itemsize


def _fused_kernel(x_ref, w_ref, o_ref, *, compute_dtype):
    # Single long-K (= D) contraction on the MXU; x is cast per-tile (VPU
    # filler under the x DMA); f32 accumulation on the MXU.
    x = x_ref[...].astype(compute_dtype)
    o_ref[...] = jnp.dot(
        x, w_ref[...], preferred_element_type=jnp.float32
    ).astype(o_ref.dtype)


def _two_stage_kernel(x_ref, a_ref, b_ref, o_ref, *, compute_dtype):
    # Fallback when materializing W = A_c @ B_c would be larger than the two
    # padded factors (only when d_pad >> r_pad). Note: for bf16 compute the
    # (TM, r_pad) intermediate is rounded to bf16 before the second dot.
    x = x_ref[...].astype(compute_dtype)
    xa = jnp.dot(x, a_ref[...], preferred_element_type=jnp.float32)
    out = jnp.dot(
        xa.astype(compute_dtype), b_ref[...], preferred_element_type=jnp.float32
    )
    o_ref[...] = out.astype(o_ref.dtype)


def nola2_forward(x, alpha, beta, A, B, rank, *, tm=512,
                  compute_dtype=jnp.bfloat16, out_dtype=None,
                  force_fused=None):
    """NOLA2 forward: (1/rank) * (x @ (alpha.A) @ (beta.B)).

    x: (M, D), alpha: (ka,), beta: (kb,), A: (ka, D, r), B: (kb, r, d).
    compute_dtype: MXU input dtype (bf16 recommended on v5e/v6e/v7x; f32
    accumulation is kept inside the kernel). x is streamed in its native dtype
    and cast per-tile in the kernel. tm ~ 512 (sweep 1024 on v6e's big VMEM).
    """
    M, D = x.shape
    ka, D_a, r = A.shape
    kb, r_b, d = B.shape
    assert D_a == D and r_b == r
    out_dtype = out_dtype or x.dtype

    # --- Tiny once-per-call precompute (XLA): basis combination.
    A_c = jnp.einsum("b,bdr->dr", alpha, A)        # (D, r)
    B_c = jnp.einsum("b,brd->rd", beta, B)         # (r, d)

    # Lane-dense padding of the small dims (zero-pad -> numerically exact).
    r_pad = _round_up(r, 128)
    d_pad = _round_up(d, 128)

    # Fuse the two matmuls whenever the fused (D, d_pad) weight is not bigger
    # than the two padded factors (always true when d <= 128).
    if force_fused is None:
        fused = r_pad * (D + d_pad) >= D * d_pad
    else:
        fused = force_fused

    # --- Row tiling over M. Cap the tile so the grid has >= 2 steps for
    # moderate M (lets the "parallel" axis shard across both v7x TCs);
    # minimum row tile is 8 (sublane), no explicit zero-pad copy of x.
    tm_eff = max(8, min(tm, _round_up(pl.cdiv(M, 2), 8), _round_up(M, 8)))
    grid = (pl.cdiv(M, tm_eff),)

    cbytes = _itemsize(compute_dtype)
    obytes = _itemsize(out_dtype)

    if fused:
        W = (A_c @ B_c) * (1.0 / rank)                                   # (D, d)
        W_p = jnp.zeros((D, d_pad), compute_dtype).at[:, :d].set(
            W.astype(compute_dtype))
        weights = (W_p,)
        weight_specs = [
            pl.BlockSpec((D, d_pad), lambda i: (0, 0),
                         pipeline_mode=pl.Buffered(1)),   # resident, 1-buffered
        ]
        kernel = functools.partial(_fused_kernel, compute_dtype=compute_dtype)
        flops = 2 * M * D * d_pad
        weight_bytes = D * d_pad * cbytes
        interm_bytes = 0
    else:
        A_p = jnp.zeros((D, r_pad), compute_dtype).at[:, :r].set(
            A_c.astype(compute_dtype))
        B_p = jnp.zeros((r_pad, d_pad), compute_dtype).at[:r, :d].set(
            (B_c * (1.0 / rank)).astype(compute_dtype))   # fold 1/rank into B
        weights = (A_p, B_p)
        weight_specs = [
            pl.BlockSpec((D, r_pad), lambda i: (0, 0),
                         pipeline_mode=pl.Buffered(1)),
            pl.BlockSpec((r_pad, d_pad), lambda i: (0, 0),
                         pipeline_mode=pl.Buffered(1)),
        ]
        kernel = functools.partial(_two_stage_kernel, compute_dtype=compute_dtype)
        flops = 2 * M * (D * r_pad + r_pad * d_pad)
        weight_bytes = (D * r_pad + r_pad * d_pad) * cbytes
        interm_bytes = tm_eff * r_pad * 4                 # f32 intermediate

    # --- VMEM budget: double-buffered x tile (native dtype) + single-buffered
    # weights + double-buffered out tile, with 2x headroom, clamped to a sane
    # range (raises v5e's 16 MiB scoped default; stays modest for v7x).
    x_tile_bytes = tm_eff * D * _itemsize(x.dtype)
    out_tile_bytes = tm_eff * d_pad * obytes
    need = 2 * x_tile_bytes + weight_bytes + 2 * out_tile_bytes + interm_bytes
    vmem_limit = int(min(max(2 * need, 32 * 1024 * 1024), 96 * 1024 * 1024))

    cost = pl.CostEstimate(
        flops=int(flops),
        transcendentals=0,
        bytes_accessed=int(M * D * _itemsize(x.dtype) + weight_bytes
                           + M * d_pad * obytes),
    )

    out = pl.pallas_call(
        kernel,
        out_shape=jax.ShapeDtypeStruct((M, d_pad), out_dtype),
        grid=grid,
        in_specs=[pl.BlockSpec((tm_eff, D), lambda i: (i, 0))] + weight_specs,
        out_specs=pl.BlockSpec((tm_eff, d_pad), lambda i: (i, 0)),
        compiler_params=pltpu.CompilerParams(
            dimension_semantics=("parallel",),
            vmem_limit_bytes=vmem_limit),
        cost_estimate=cost,
    )(x, *weights)

    return out[:, :d]


if __name__ == "__main__":
    # Small, module-consistent shapes: D = in_features, d = out_features.
    in_features, out_features = 32, 16
    ka, kb, rank = 16, 16, 8
    D, d = in_features, out_features
    M = 8  # flattened batch of input rows

    key = jax.random.PRNGKey(0)
    k_a, k_b, k_x = jax.random.split(key, 3)

    # Deterministic stand-in for kaiming_uniform_(a=sqrt(5)):
    # bound = 1/sqrt(fan_in), fan_in = prod of trailing dims.
    bound_a = 1.0 / float(D * rank) ** 0.5
    bound_b = 1.0 / float(rank * d) ** 0.5
    A = jax.random.uniform(k_a, (ka, D, rank), jnp.float32, -bound_a, bound_a)
    B = jax.random.uniform(k_b, (kb, rank, d), jnp.float32, -bound_b, bound_b)
    nola_alpha = jnp.ones((ka,), jnp.float32) / ka
    nola_beta = jnp.ones((kb,), jnp.float32) / kb
    x = jax.random.normal(k_x, (M, D), jnp.float32)

    # Pure-JAX reference (module semantics).
    A_c = jnp.einsum("b,bdr->dr", nola_alpha, A)
    B_c = jnp.einsum("b,brd->rd", nola_beta, B)
    ref = (1.0 / rank) * (x @ A_c @ B_c)

    # f32 MXU path, fused single-matmul kernel (default dispatch): tight check.
    out_f32 = jax.block_until_ready(
        nola2_forward(x, nola_alpha, nola_beta, A, B, rank,
                      compute_dtype=jnp.float32))
    assert out_f32.shape == (M, d)
    assert jnp.allclose(out_f32, ref, atol=1e-5, rtol=1e-4), "f32 fused mismatch"

    # f32 two-stage fallback kernel: also tight.
    out_2s = jax.block_until_ready(
        nola2_forward(x, nola_alpha, nola_beta, A, B, rank,
                      compute_dtype=jnp.float32, force_fused=False))
    assert out_2s.shape == (M, d)
    assert jnp.allclose(out_2s, ref, atol=1e-5, rtol=1e-4), "f32 two-stage mismatch"

    # bf16 MXU path (recommended default): looser check vs f32 reference.
    out_bf16 = jax.block_until_ready(
        nola2_forward(x, nola_alpha, nola_beta, A, B, rank,
                      compute_dtype=jnp.bfloat16))
    atol = 3e-2 * float(jnp.max(jnp.abs(ref))) + 1e-5
    assert out_bf16.shape == (M, d)
    assert jnp.allclose(out_bf16.astype(jnp.float32), ref,
                        atol=atol, rtol=3e-2), "bf16 mismatch"

    print("KERNEL_OK")
</pallas_src>

<mosaic_0001>
module attributes {stable_mosaic.version = 11 : i64} {
  func.func @_fused_kernel(%arg0: i32, %arg1: memref<8x32xf32, #tpu.memory_space<vmem>>, %arg2: memref<32x128xf32, #tpu.memory_space<vmem>>, %arg3: memref<8x128xf32, #tpu.memory_space<vmem>>) attributes {dimension_semantics = [#tpu.dimension_semantics<parallel>], iteration_bounds = array<i64: 1>, scalar_prefetch = 0 : i64, scratch_operands = 0 : i64, tpu.core_type = #tpu.core_type<tc>, window_params = [{transform_indices = @transform_0, window_bounds = array<i64: 8, 32>}, {pipeline_mode = #tpu.pipeline_mode<synchronous>, transform_indices = @transform_1, window_bounds = array<i64: 32, 128>}, {transform_indices = @transform_2, window_bounds = array<i64: 8, 128>}]} {
    %c0 = arith.constant 0 : index
    %c0_0 = arith.constant 0 : index
    %0 = vector.load %arg1[%c0, %c0_0] : memref<8x32xf32, #tpu.memory_space<vmem>>, vector<8x32xf32>
    %c0_1 = arith.constant 0 : index
    %c0_2 = arith.constant 0 : index
    %1 = vector.load %arg2[%c0_1, %c0_2] : memref<32x128xf32, #tpu.memory_space<vmem>>, vector<32x128xf32>
    %cst = arith.constant dense<0.000000e+00> : vector<8x128xf32>
    %2 = tpu.matmul %0, %1, %cst {dimension_numbers = #tpu.dot_dimension_numbers<[1], [0], [0], [1], [0, 0, 1, 1], [], []>} : vector<8x32xf32>, vector<32x128xf32>, vector<8x128xf32> -> vector<8x128xf32>
    %c0_3 = arith.constant 0 : index
    %c0_4 = arith.constant 0 : index
    %3 = vector.load %arg3[%c0_3, %c0_4] : memref<8x128xf32, #tpu.memory_space<vmem>>, vector<8x128xf32>
    tpu.vector_store %arg3[%c0_3, %c0_4], %2 {strides = array<i32>} : memref<8x128xf32, #tpu.memory_space<vmem>>, vector<8x128xf32>,
    return
  }
  func.func @transform_0(%arg0: i32) -> (i32, i32) {
    %c0_i32 = arith.constant 0 : i32
    %c0_i32_0 = arith.constant 0 : i32
    return %arg0, %c0_i32 : i32, i32
  }
  func.func @transform_1(%arg0: i32) -> (i32, i32) {
    %c0_i32 = arith.constant 0 : i32
    %c0_i32_0 = arith.constant 0 : i32
    %c0_i32_1 = arith.constant 0 : i32
    return %c0_i32, %c0_i32_0 : i32, i32
  }
  func.func @transform_2(%arg0: i32) -> (i32, i32) {
    %c0_i32 = arith.constant 0 : i32
    %c0_i32_0 = arith.constant 0 : i32
    return %arg0, %c0_i32 : i32, i32
  }
}

</mosaic_0001>

<bundles_post_ra>
// kernel: tpu_custom_call.1
= control target key start
LH: loop header
LB: loop body
LE: loop exit
PB: predicated region body
PF: predicated region fallthrough
CT: control target
= control target key end

     0   :  { %7 = vsyncpa [#allocation3], 0  ;;  %s255_s0 = inlined_call_operand.hbm [shape: f32[8,32], index: 0, kind: input, shape index: {}]   ;;  %s256_s1 = inlined_call_operand.hbm [shape: f32[32,128], index: 1, kind: input, shape index: {}]   ;;  %s257_s2 = inlined_call_operand.hbm [shape: f32[8,128], index: 2, kind: output, shape index: {}]  }
   0x1   :  { %8 = vsyncpa [#allocation6], 0 }
   0x2   :  { %9 = vsyncpa [#allocation4], 0  ;;  %s224_s9 = smov [#allocation2]   ;;  %s225_s11 = smov [#allocation5]  }
   0x3   :  { %s16_s10 = sshll.u32 %s224_s9, 4  ;;  %s25_s12 = sshll.u32 %s225_s11, 4  ;;  %s17_s10 = int_to_ptr.vmem [resolvable:$true] %s16_s10  ;;  %s26_s12 = int_to_ptr.vmem [resolvable:$true] %s25_s12 }
   0x4   :  { %s166_s13 = scalar_lea.vmem %s17_s10, 128  ;;  %p171_p1 = scmp.lt.s32.totalorder %s17_s10, %s17_s10 }
   0x5   :  { %p167_p0 = scmp.ne.s32.totalorder %s17_s10, %s166_s13  ;;  %p172_p2 = scmp.lt.s32.totalorder %s166_s13, %s166_s13 }
   0x7   :  { %p173_p3 = por %p172_p2, %p171_p1 }
   0x9   :  { %p174_p4 = pnand %p173_p3, %p167_p0 }
   0xb   :  { %177 = shalt.err (!%p174_p4)
}
   0xc   :  { %19 = dma.hbm_to_vmem [thread:$0]  %s255_s0, 128, %s17_s10, [#allocation3]  }
   0xd   :  { %s186_s16 = scalar_lea.vmem %s26_s12, 512  ;;  %p191_p6 = scmp.lt.s32.totalorder %s26_s12, %s26_s12 }
   0xe   :  { %p187_p5 = scmp.ne.s32.totalorder %s26_s12, %s186_s16  ;;  %p192_p7 = scmp.lt.s32.totalorder %s186_s16, %s186_s16 }
  0x10   :  { %p193_p8 = por %p192_p7, %p191_p6 }
  0x12   :  { %p194_p9 = pnand %p193_p8, %p187_p5 }
  0x14   :  { %197 = shalt.err (!%p194_p9)
}
  0x15   :  { %s226_s17 = smov 128   ;;  %s227_s18 = smov 8  }
  0x16   :  { %31 = dma.hbm_to_vmem [thread:$0]  %s256_s1, 512, %s26_s12, [#allocation6], %s226_s17, %s226_s17, %s227_s18  }
  0x17   :  { %218 = dma.done.wait [#allocation3], 128  }
  0x18   :  { %219 = vsyncadd [#allocation3], 4294967168 }
  0x19   :  { %220 = dma.done.wait [#allocation6], 512  }
  0x1a   :  { %221 = vsyncadd [#allocation6], 4294966784  ;;  %v228_v0 = vmov 0.0   ;;  %vm229_vm0 = vmmov 0   ;;  %v42_v1 = vld [vmem:[#allocation5 + $0x18] sm:$0xff]  ;;  %v41_v2 = vld [vmem:[#allocation5 + $0x10] sm:$0xff] }
  0x1b   :  { %140 = vmatprep.subr.mxu0 %v228_v0  ;;  %148 = vmatprep.mubr.msk.f32.mxu0 %vm229_vm0, %v228_v0  ;;  %v40_v3 = vld [vmem:[#allocation5 + $0x8] sm:$0xff]  ;;  %v39_v4 = vld [vmem:[#allocation5] sm:$0xff]  ;;  %v38_v5 = vld [vmem:[#allocation2] sm:$0xff]  ;;  %vm43_vm1 = vcmask 261120   ;;  %s230_s0 = smov [#allocation7]  }
  0x1c   :  { %141 = vmatpush3.msra.mxu0 %v42_v1  ;;  %s124_s1 = sshll.u32 %s230_s0, 4  ;;  %s125_s1 = int_to_ptr.vmem [resolvable:$true] %s124_s1 }
  0x1d   :  { %142 = vmatprep.subr.mxu0 %v228_v0  ;;  %s198_s21 = scalar_lea.vmem %s125_s1, 128  ;;  %p203_p11 = scmp.lt.s32.totalorder %s125_s1, %s125_s1 }
  0x1e   :  { %143 = vmatpush3.msra.mxu0 %v41_v2  ;;  %p199_p10 = scmp.ne.s32.totalorder %s125_s1, %s198_s21  ;;  %p204_p12 = scmp.lt.s32.totalorder %s198_s21, %s198_s21 }
  0x1f   :  { %144 = vmatprep.subr.mxu0 %v228_v0 }
  0x20   :  { %145 = vmatpush3.msra.mxu0 %v40_v3  ;;  %p205_p13 = por %p204_p12, %p203_p11 }
  0x21   :  { %146 = vmatprep.subr.mxu0 %v228_v0 }
  0x22   :  { %147 = vmatpush3.msra.mxu0 %v39_v4  ;;  %p206_p0 = pnand %p205_p13, %p199_p10 }
  0x23   :  { %149 = vmatmul.mubr.msk.f32.vlgmr.msra.gmra.mxu0 %vm43_vm1, %v38_v5 }
  0xe3   :  { %v113_v6 = vpop.f32.mrf.mxu0 }
  0xe4   :  { %117 = vst [vmem:[#allocation7] sm:$0xff] %v113_v6 }
  0xe5   :  { %v150_v7 = vpop.f32.mrf.mxu0 }
  0xe6   :  { %209 = shalt.err (!%p206_p0)
}
  0xe7   :  { %127 = dma.vmem_to_hbm [thread:$0]  %s125_s1, 128, %s257_s2, [#allocation4]  }
  0xe8   :  { %222 = dma.done.wait [#allocation4], 128  }
  0xe9   :  { %223 = vsyncadd [#allocation4], 4294967168 }
  0xea   :  { %131 = vsyncpa [#allocation3], 1 }
  0xeb   :  { %132 = vsyncpa [#allocation6], 1 }
  0xec   :  { %133 = vsyncpa [#allocation4], 1 }

</bundles_post_ra>
